<compile_context>
chip_gen: v7x
topology: tpu7x:2x2x1
jax: 0.10.0
libtpu: 0.0.40
codegen_flags: <defaults>
</compile_context>

<pallas_src>
import numpy as np
import jax
import jax.numpy as jnp
from jax.experimental import pallas as pl
from jax.experimental.pallas import tpu as pltpu

_LANES = 128          # lane width of the (sublane, lane) vreg tile
_SMOOTH = 0.0001


def _make_dice_kernel(C, TR, S_valid, w_list, uniform, need_mask):
    """Build the per-(batch, spatial-chunk) kernel.

    logits_ref: (1, C, TR, 128)   tgt_ref: (1, 1, TR, 128) int8
    inter_ref / card_ref: (1, 1, 128) f32 partial sums for this chunk.
    Class weights are baked in as compile-time constants (module fixes them
    at __init__).
    """
    w0 = float(w_list[0])

    def kernel(logits_ref, tgt_ref, inter_ref, card_ref):
        tgt = tgt_ref[0, 0].astype(jnp.int32)                      # (TR, 128)

        # Numerically stable softmax pieces; max over classes is a VALU chain
        # across class planes (C is a leading block dim, not sublanes).
        m = logits_ref[0, 0].astype(jnp.float32)
        for c in range(1, C):
            m = jnp.maximum(m, logits_ref[0, c].astype(jnp.float32))

        sum_e = jnp.zeros((TR, _LANES), jnp.float32)
        sel_e = jnp.zeros((TR, _LANES), jnp.float32)   # e_t (uniform) / w_t*e_t
        if uniform:
            for c in range(C):
                e_c = jnp.exp(logits_ref[0, c].astype(jnp.float32) - m)
                sum_e = sum_e + e_c
                sel_e = jnp.where(tgt == c, e_c, sel_e)
        else:
            we_sum = jnp.zeros((TR, _LANES), jnp.float32)
            wt = jnp.zeros((TR, _LANES), jnp.float32)
            for c in range(C):
                e_c = jnp.exp(logits_ref[0, c].astype(jnp.float32) - m)
                we_c = e_c * w_list[c]
                sel = tgt == c
                sum_e = sum_e + e_c
                we_sum = we_sum + we_c
                sel_e = jnp.where(sel, we_c, sel_e)
                wt = jnp.where(sel, jnp.float32(w_list[c]), wt)

        # Approx reciprocal on the (otherwise idle) EUP slot + one Newton step
        # squares the ~2^-12 approx error to below f32 ulp — safe for 1e-5.
        r = pl.reciprocal(sum_e, approx=True)
        inv = r * (2.0 - sum_e * r)

        inter_pix = sel_e * inv                                    # w_t * p_t
        if uniform:
            card_pix = sum_e * inv + 1.0                           # sum_c p_c + 1
        else:
            card_pix = we_sum * inv + wt                           # sum_c w_c p_c + w_t

        if need_mask:
            # Zero contributions of wrapper-padded pixels and Pallas OOB rows
            # of the last chunk.  Use `where`, not multiply: OOB block padding
            # is unspecified and may produce inf/NaN upstream.
            s_idx = pl.program_id(1)
            rows = jax.lax.broadcasted_iota(jnp.int32, (TR, _LANES), 0)
            lanes = jax.lax.broadcasted_iota(jnp.int32, (TR, _LANES), 1)
            pix = (s_idx * TR + rows) * _LANES + lanes
            valid = pix < S_valid
            inter_pix = jnp.where(valid, inter_pix, 0.0)
            card_pix = jnp.where(valid, card_pix, 0.0)

        inter = jnp.sum(inter_pix)
        card = jnp.sum(card_pix)
        if uniform:
            inter = inter * w0
            card = card * w0
        inter_ref[...] = jnp.full((1, 1, _LANES), inter, jnp.float32)
        card_ref[...] = jnp.full((1, 1, _LANES), card, jnp.float32)

    return kernel


def _choose_rows(R, C, logits_itemsize, max_pixels, vmem_budget_bytes):
    """Rows (of 128 lanes) per grid step: as large as the VMEM budget allows."""
    per_row = 2 * C * _LANES * logits_itemsize   # double-buffered logits block
    per_row += 2 * _LANES                        # double-buffered int8 targets
    per_row += 8 * _LANES * 4                    # ~8 live (rows, 128) f32 temps
    cap = max(8, int(vmem_budget_bytes) // per_row)
    cap = min(cap, max(1, int(max_pixels) // _LANES))
    if R <= cap:
        return R                                  # single chunk: full-dim block
    tr = (max(cap, 32) // 32) * 32                # multiple of 32 (int8 packing)
    return min(tr, R)


def soft_dice_loss(logits, targets, weights, *, max_pixels_per_step=65536,
                   vmem_budget_bytes=12 * 1024 * 1024):
    """Pallas equivalent of SoftDiceLoss.forward(logits, targets)."""
    N, C = int(logits.shape[0]), int(logits.shape[1])
    S = int(np.prod(logits.shape[2:]))
    assert C <= 127, "class ids are carried as int8 (requires 0 <= t < C <= 127)"

    # Class weights are fixed at module init (numpy array) -> bake as constants.
    # TODO(synk): a traced-weights path would need an SMEM weight input.
    w_np = np.asarray(jax.device_get(weights), dtype=np.float32).reshape(-1)
    assert w_np.shape[0] == C
    uniform = bool(np.all(w_np == w_np[0]))

    # Flatten spatial, pad to a lane multiple if needed, and re-layout so
    # spatial fills the (sublane, lane) tile: (N, C, R, 128).
    R = -(-S // _LANES)
    S_pad = R * _LANES
    logits_r = jnp.reshape(logits, (N, C, S))
    targets_r = jnp.reshape(targets, (N, 1, S)).astype(jnp.int8)  # 1 B/pixel HBM
    if S_pad != S:
        logits_r = jnp.pad(logits_r, ((0, 0), (0, 0), (0, S_pad - S)))
        targets_r = jnp.pad(targets_r, ((0, 0), (0, 0), (0, S_pad - S)))
    logits_r = jnp.reshape(logits_r, (N, C, R, _LANES))
    targets_r = jnp.reshape(targets_r, (N, 1, R, _LANES))

    TR = _choose_rows(R, C, jnp.dtype(logits.dtype).itemsize,
                      max_pixels_per_step, vmem_budget_bytes)
    SC = -(-R // TR)                         # spatial chunks (last may be partial)
    need_mask = (S_pad != S) or (R % TR != 0)

    kernel = _make_dice_kernel(C, TR, S, [float(v) for v in w_np], uniform,
                               need_mask)

    inter_p, card_p = pl.pallas_call(
        kernel,
        out_shape=(jax.ShapeDtypeStruct((N, SC, _LANES), jnp.float32),
                   jax.ShapeDtypeStruct((N, SC, _LANES), jnp.float32)),
        grid=(N, SC),
        in_specs=[
            pl.BlockSpec((1, C, TR, _LANES), lambda n, s: (n, 0, s, 0)),
            pl.BlockSpec((1, 1, TR, _LANES), lambda n, s: (n, 0, s, 0)),
        ],
        out_specs=(
            pl.BlockSpec((1, 1, _LANES), lambda n, s: (n, s, 0)),
            pl.BlockSpec((1, 1, _LANES), lambda n, s: (n, s, 0)),
        ),
        compiler_params=pltpu.CompilerParams(
            # Each (batch, chunk) step is independent -> both axes parallel,
            # so v7x megacore can shard the spatial axis even when N == 1.
            dimension_semantics=("parallel", "parallel"),
            vmem_limit_bytes=32 * 1024 * 1024,
        ),
    )(logits_r, targets_r)

    # Tiny wrapper-side reduction + dice formula (exact PyTorch semantics).
    inter_b = jnp.sum(inter_p[:, :, 0], axis=1)        # (N,)
    card_b = jnp.sum(card_p[:, :, 0], axis=1)           # (N,)
    dice = 2.0 * inter_b / (card_b + _SMOOTH)
    return 1.0 - jnp.sum(dice) / N


def _reference_loss(logits, targets, weights):
    """Pure-JAX reference mirroring the PyTorch module exactly."""
    C = logits.shape[1]
    probs = jax.nn.softmax(logits.astype(jnp.float32), axis=1)
    onehot = jax.nn.one_hot(targets, C, axis=1, dtype=jnp.float32)
    w = jnp.asarray(weights, dtype=jnp.float32).reshape(1, C, 1, 1, 1)
    dims = tuple(range(1, probs.ndim))
    inter = jnp.sum(probs * onehot * w, axis=dims)
    card = jnp.sum((probs + onehot) * w, axis=dims)
    dice = 2.0 * inter / (card + _SMOOTH)
    return 1.0 - jnp.sum(dice) / logits.shape[0]


if __name__ == "__main__":
    nb_classes = 6
    key = jax.random.PRNGKey(0)
    k1, k2, k3, k4 = jax.random.split(key, 4)

    # Case 1: module defaults (uniform all-ones weights), tidy spatial size,
    # single spatial chunk, f32 logits.
    w1 = np.array([1, 1, 1, 1, 1, 1])
    N, C, D, H, W = 2, nb_classes, 4, 8, 8
    logits1 = jax.random.normal(k1, (N, C, D, H, W), dtype=jnp.float32)
    targets1 = jax.random.randint(k2, (N, D, H, W), 0, C, dtype=jnp.int32)
    loss1 = jax.block_until_ready(soft_dice_loss(logits1, targets1, w1))
    ref1 = jax.block_until_ready(_reference_loss(logits1, targets1, w1))
    assert jnp.allclose(loss1, ref1, rtol=1e-5, atol=1e-5), (loss1, ref1)

    # Case 2: non-uniform weights, awkward spatial size (wrapper lane padding),
    # multiple spatial chunks with a partial last chunk (in-kernel masking),
    # bf16 logits, forced small tile to exercise the multi-chunk path.
    w2 = np.array([1.0, 2.0, 0.5, 1.0, 3.0, 1.0], dtype=np.float32)
    D2, H2, W2 = 5, 32, 30                      # S = 4800 -> R = 38 rows (padded)
    logits2 = jax.random.normal(
        k3, (N, C, D2, H2, W2), dtype=jnp.float32).astype(jnp.bfloat16)
    targets2 = jax.random.randint(k4, (N, D2, H2, W2), 0, C, dtype=jnp.int32)
    loss2 = jax.block_until_ready(
        soft_dice_loss(logits2, targets2, w2, max_pixels_per_step=4096))
    ref2 = jax.block_until_ready(_reference_loss(logits2, targets2, w2))
    assert jnp.allclose(loss2, ref2, rtol=1e-5, atol=1e-5), (loss2, ref2)

    print("KERNEL_OK")
</pallas_src>

<mosaic_0001>
module attributes {stable_mosaic.version = 11 : i64} {
  func.func @kernel(%arg0: i32, %arg1: i32, %arg2: memref<1x6x2x128xf32, #tpu.memory_space<vmem>>, %arg3: memref<1x1x2x128xi8, #tpu.memory_space<vmem>>, %arg4: memref<1x1x128xf32, #tpu.memory_space<vmem>>, %arg5: memref<1x1x128xf32, #tpu.memory_space<vmem>>) attributes {dimension_semantics = [#tpu.dimension_semantics<parallel>, #tpu.dimension_semantics<parallel>], iteration_bounds = array<i64: 2, 1>, scalar_prefetch = 0 : i64, scratch_operands = 0 : i64, tpu.core_type = #tpu.core_type<tc>, window_params = [{transform_indices = @transform_0, window_bounds = array<i64: 1, 6, 2, 128>}, {transform_indices = @transform_1, window_bounds = array<i64: 1, 1, 2, 128>}, {transform_indices = @transform_2, window_bounds = array<i64: 1, 1, 128>}, {transform_indices = @transform_3, window_bounds = array<i64: 1, 1, 128>}]} {
    %c0 = arith.constant 0 : index
    %c0_0 = arith.constant 0 : index
    %c0_1 = arith.constant 0 : index
    %c0_2 = arith.constant 0 : index
    %0 = vector.load %arg3[%c0, %c0_0, %c0_1, %c0_2] : memref<1x1x2x128xi8, #tpu.memory_space<vmem>>, vector<1x1x2x128xi8>
    %1 = vector.shape_cast %0 : vector<1x1x2x128xi8> to vector<2x128xi8>
    %2 = arith.extsi %1 : vector<2x128xi8> to vector<2x128xi32>
    %c0_3 = arith.constant 0 : index
    %c0_4 = arith.constant 0 : index
    %c0_5 = arith.constant 0 : index
    %c0_6 = arith.constant 0 : index
    %3 = vector.load %arg2[%c0_3, %c0_4, %c0_5, %c0_6] : memref<1x6x2x128xf32, #tpu.memory_space<vmem>>, vector<1x1x2x128xf32>
    %4 = vector.shape_cast %3 : vector<1x1x2x128xf32> to vector<2x128xf32>
    %c0_7 = arith.constant 0 : index
    %c1 = arith.constant 1 : index
    %c0_8 = arith.constant 0 : index
    %c0_9 = arith.constant 0 : index
    %5 = vector.load %arg2[%c0_7, %c1, %c0_8, %c0_9] : memref<1x6x2x128xf32, #tpu.memory_space<vmem>>, vector<1x1x2x128xf32>
    %6 = vector.shape_cast %5 : vector<1x1x2x128xf32> to vector<2x128xf32>
    %7 = arith.maximumf %4, %6 : vector<2x128xf32>
    %c0_10 = arith.constant 0 : index
    %c2 = arith.constant 2 : index
    %c0_11 = arith.constant 0 : index
    %c0_12 = arith.constant 0 : index
    %8 = vector.load %arg2[%c0_10, %c2, %c0_11, %c0_12] : memref<1x6x2x128xf32, #tpu.memory_space<vmem>>, vector<1x1x2x128xf32>
    %9 = vector.shape_cast %8 : vector<1x1x2x128xf32> to vector<2x128xf32>
    %10 = arith.maximumf %7, %9 : vector<2x128xf32>
    %c0_13 = arith.constant 0 : index
    %c3 = arith.constant 3 : index
    %c0_14 = arith.constant 0 : index
    %c0_15 = arith.constant 0 : index
    %11 = vector.load %arg2[%c0_13, %c3, %c0_14, %c0_15] : memref<1x6x2x128xf32, #tpu.memory_space<vmem>>, vector<1x1x2x128xf32>
    %12 = vector.shape_cast %11 : vector<1x1x2x128xf32> to vector<2x128xf32>
    %13 = arith.maximumf %10, %12 : vector<2x128xf32>
    %c0_16 = arith.constant 0 : index
    %c4 = arith.constant 4 : index
    %c0_17 = arith.constant 0 : index
    %c0_18 = arith.constant 0 : index
    %14 = vector.load %arg2[%c0_16, %c4, %c0_17, %c0_18] : memref<1x6x2x128xf32, #tpu.memory_space<vmem>>, vector<1x1x2x128xf32>
    %15 = vector.shape_cast %14 : vector<1x1x2x128xf32> to vector<2x128xf32>
    %16 = arith.maximumf %13, %15 : vector<2x128xf32>
    %c0_19 = arith.constant 0 : index
    %c5 = arith.constant 5 : index
    %c0_20 = arith.constant 0 : index
    %c0_21 = arith.constant 0 : index
    %17 = vector.load %arg2[%c0_19, %c5, %c0_20, %c0_21] : memref<1x6x2x128xf32, #tpu.memory_space<vmem>>, vector<1x1x2x128xf32>
    %18 = vector.shape_cast %17 : vector<1x1x2x128xf32> to vector<2x128xf32>
    %19 = arith.maximumf %16, %18 : vector<2x128xf32>
    %cst = arith.constant 0.000000e+00 : f32
    %20 = vector.broadcast %cst : f32 to vector<2x128xf32>
    %cst_22 = arith.constant 0.000000e+00 : f32
    %21 = vector.broadcast %cst_22 : f32 to vector<2x128xf32>
    %c0_23 = arith.constant 0 : index
    %c0_24 = arith.constant 0 : index
    %c0_25 = arith.constant 0 : index
    %c0_26 = arith.constant 0 : index
    %22 = vector.load %arg2[%c0_23, %c0_24, %c0_25, %c0_26] : memref<1x6x2x128xf32, #tpu.memory_space<vmem>>, vector<1x1x2x128xf32>
    %23 = vector.shape_cast %22 : vector<1x1x2x128xf32> to vector<2x128xf32>
    %24 = arith.subf %23, %19 : vector<2x128xf32>
    %25 = math.exp %24 : vector<2x128xf32>
    %26 = arith.addf %20, %25 : vector<2x128xf32>
    %c0_i32 = arith.constant 0 : i32
    %27 = vector.broadcast %c0_i32 : i32 to vector<2x128xi32>
    %28 = arith.cmpi eq, %2, %27 : vector<2x128xi32>
    %29 = arith.select %28, %25, %21 : vector<2x128xi1>, vector<2x128xf32>
    %c0_27 = arith.constant 0 : index
    %c1_28 = arith.constant 1 : index
    %c0_29 = arith.constant 0 : index
    %c0_30 = arith.constant 0 : index
    %30 = vector.load %arg2[%c0_27, %c1_28, %c0_29, %c0_30] : memref<1x6x2x128xf32, #tpu.memory_space<vmem>>, vector<1x1x2x128xf32>
    %31 = vector.shape_cast %30 : vector<1x1x2x128xf32> to vector<2x128xf32>
    %32 = arith.subf %31, %19 : vector<2x128xf32>
    %33 = math.exp %32 : vector<2x128xf32>
    %34 = arith.addf %26, %33 : vector<2x128xf32>
    %c1_i32 = arith.constant 1 : i32
    %35 = vector.broadcast %c1_i32 : i32 to vector<2x128xi32>
    %36 = arith.cmpi eq, %2, %35 : vector<2x128xi32>
    %37 = arith.select %36, %33, %29 : vector<2x128xi1>, vector<2x128xf32>
    %c0_31 = arith.constant 0 : index
    %c2_32 = arith.constant 2 : index
    %c0_33 = arith.constant 0 : index
    %c0_34 = arith.constant 0 : index
    %38 = vector.load %arg2[%c0_31, %c2_32, %c0_33, %c0_34] : memref<1x6x2x128xf32, #tpu.memory_space<vmem>>, vector<1x1x2x128xf32>
    %39 = vector.shape_cast %38 : vector<1x1x2x128xf32> to vector<2x128xf32>
    %40 = arith.subf %39, %19 : vector<2x128xf32>
    %41 = math.exp %40 : vector<2x128xf32>
    %42 = arith.addf %34, %41 : vector<2x128xf32>
    %c2_i32 = arith.constant 2 : i32
    %43 = vector.broadcast %c2_i32 : i32 to vector<2x128xi32>
    %44 = arith.cmpi eq, %2, %43 : vector<2x128xi32>
    %45 = arith.select %44, %41, %37 : vector<2x128xi1>, vector<2x128xf32>
    %c0_35 = arith.constant 0 : index
    %c3_36 = arith.constant 3 : index
    %c0_37 = arith.constant 0 : index
    %c0_38 = arith.constant 0 : index
    %46 = vector.load %arg2[%c0_35, %c3_36, %c0_37, %c0_38] : memref<1x6x2x128xf32, #tpu.memory_space<vmem>>, vector<1x1x2x128xf32>
    %47 = vector.shape_cast %46 : vector<1x1x2x128xf32> to vector<2x128xf32>
    %48 = arith.subf %47, %19 : vector<2x128xf32>
    %49 = math.exp %48 : vector<2x128xf32>
    %50 = arith.addf %42, %49 : vector<2x128xf32>
    %c3_i32 = arith.constant 3 : i32
    %51 = vector.broadcast %c3_i32 : i32 to vector<2x128xi32>
    %52 = arith.cmpi eq, %2, %51 : vector<2x128xi32>
    %53 = arith.select %52, %49, %45 : vector<2x128xi1>, vector<2x128xf32>
    %c0_39 = arith.constant 0 : index
    %c4_40 = arith.constant 4 : index
    %c0_41 = arith.constant 0 : index
    %c0_42 = arith.constant 0 : index
    %54 = vector.load %arg2[%c0_39, %c4_40, %c0_41, %c0_42] : memref<1x6x2x128xf32, #tpu.memory_space<vmem>>, vector<1x1x2x128xf32>
    %55 = vector.shape_cast %54 : vector<1x1x2x128xf32> to vector<2x128xf32>
    %56 = arith.subf %55, %19 : vector<2x128xf32>
    %57 = math.exp %56 : vector<2x128xf32>
    %58 = arith.addf %50, %57 : vector<2x128xf32>
    %c4_i32 = arith.constant 4 : i32
    %59 = vector.broadcast %c4_i32 : i32 to vector<2x128xi32>
    %60 = arith.cmpi eq, %2, %59 : vector<2x128xi32>
    %61 = arith.select %60, %57, %53 : vector<2x128xi1>, vector<2x128xf32>
    %c0_43 = arith.constant 0 : index
    %c5_44 = arith.constant 5 : index
    %c0_45 = arith.constant 0 : index
    %c0_46 = arith.constant 0 : index
    %62 = vector.load %arg2[%c0_43, %c5_44, %c0_45, %c0_46] : memref<1x6x2x128xf32, #tpu.memory_space<vmem>>, vector<1x1x2x128xf32>
    %63 = vector.shape_cast %62 : vector<1x1x2x128xf32> to vector<2x128xf32>
    %64 = arith.subf %63, %19 : vector<2x128xf32>
    %65 = math.exp %64 : vector<2x128xf32>
    %66 = arith.addf %58, %65 : vector<2x128xf32>
    %c5_i32 = arith.constant 5 : i32
    %67 = vector.broadcast %c5_i32 : i32 to vector<2x128xi32>
    %68 = arith.cmpi eq, %2, %67 : vector<2x128xi32>
    %69 = arith.select %68, %65, %61 : vector<2x128xi1>, vector<2x128xf32>
    %70 = tpu.reciprocal %66 {approx = true} : vector<2x128xf32> -> vector<2x128xf32>
    %71 = arith.mulf %66, %70 : vector<2x128xf32>
    %cst_47 = arith.constant 2.000000e+00 : f32
    %72 = vector.broadcast %cst_47 : f32 to vector<2x128xf32>
    %73 = arith.subf %72, %71 : vector<2x128xf32>
    %74 = arith.mulf %70, %73 : vector<2x128xf32>
    %75 = arith.mulf %69, %74 : vector<2x128xf32>
    %76 = arith.mulf %66, %74 : vector<2x128xf32>
    %cst_48 = arith.constant 1.000000e+00 : f32
    %77 = vector.broadcast %cst_48 : f32 to vector<2x128xf32>
    %78 = arith.addf %76, %77 : vector<2x128xf32>
    %79 = vector.shape_cast %75 : vector<2x128xf32> to vector<1x2x128xf32>
    %cst_49 = arith.constant dense<0.000000e+00> : vector<1xf32>
    %80 = vector.multi_reduction <add>, %79, %cst_49 [1, 2] : vector<1x2x128xf32> to vector<1xf32>
    %81 = vector.shape_cast %80 : vector<1xf32> to vector<1x1x1xf32>
    %82 = vector.extract %81[0, 0, 0] : f32 from vector<1x1x1xf32>
    %83 = vector.shape_cast %78 : vector<2x128xf32> to vector<1x2x128xf32>
    %cst_50 = arith.constant dense<0.000000e+00> : vector<1xf32>
    %84 = vector.multi_reduction <add>, %83, %cst_50 [1, 2] : vector<1x2x128xf32> to vector<1xf32>
    %85 = vector.shape_cast %84 : vector<1xf32> to vector<1x1x1xf32>
    %86 = vector.extract %85[0, 0, 0] : f32 from vector<1x1x1xf32>
    %cst_51 = arith.constant 1.000000e+00 : f32
    %87 = arith.mulf %82, %cst_51 : f32
    %cst_52 = arith.constant 1.000000e+00 : f32
    %88 = arith.mulf %86, %cst_52 : f32
    %89 = vector.broadcast %87 : f32 to vector<1x1x128xf32>
    %c0_53 = arith.constant 0 : index
    %c0_54 = arith.constant 0 : index
    %c0_55 = arith.constant 0 : index
    %90 = vector.load %arg4[%c0_53, %c0_54, %c0_55] : memref<1x1x128xf32, #tpu.memory_space<vmem>>, vector<1x1x128xf32>
    tpu.vector_store %arg4[%c0_53, %c0_54, %c0_55], %89 {strides = array<i32>} : memref<1x1x128xf32, #tpu.memory_space<vmem>>, vector<1x1x128xf32>,
    %91 = vector.broadcast %88 : f32 to vector<1x1x128xf32>
    %c0_56 = arith.constant 0 : index
    %c0_57 = arith.constant 0 : index
    %c0_58 = arith.constant 0 : index
    %92 = vector.load %arg5[%c0_56, %c0_57, %c0_58] : memref<1x1x128xf32, #tpu.memory_space<vmem>>, vector<1x1x128xf32>
    tpu.vector_store %arg5[%c0_56, %c0_57, %c0_58], %91 {strides = array<i32>} : memref<1x1x128xf32, #tpu.memory_space<vmem>>, vector<1x1x128xf32>,
    return
  }
  func.func @transform_0(%arg0: i32, %arg1: i32) -> (i32, i32, i32, i32) {
    %c0_i32 = arith.constant 0 : i32
    %c0_i32_0 = arith.constant 0 : i32
    %c0_i32_1 = arith.constant 0 : i32
    return %arg0, %c0_i32, %arg1, %c0_i32_0 : i32, i32, i32, i32
  }
  func.func @transform_1(%arg0: i32, %arg1: i32) -> (i32, i32, i32, i32) {
    %c0_i32 = arith.constant 0 : i32
    %c0_i32_0 = arith.constant 0 : i32
    %c0_i32_1 = arith.constant 0 : i32
    return %arg0, %c0_i32, %arg1, %c0_i32_0 : i32, i32, i32, i32
  }
  func.func @transform_2(%arg0: i32, %arg1: i32) -> (i32, i32, i32) {
    %c0_i32 = arith.constant 0 : i32
    %c0_i32_0 = arith.constant 0 : i32
    return %arg0, %arg1, %c0_i32 : i32, i32, i32
  }
  func.func @transform_3(%arg0: i32, %arg1: i32) -> (i32, i32, i32) {
    %c0_i32 = arith.constant 0 : i32
    %c0_i32_0 = arith.constant 0 : i32
    return %arg0, %arg1, %c0_i32 : i32, i32, i32
  }
}

</mosaic_0001>

<bundles_post_ra>
// kernel: tpu_custom_call.1
= control target key start
LH: loop header
LB: loop body
LE: loop exit
PB: predicated region body
PF: predicated region fallthrough
CT: control target
= control target key end

     0   :  { %9 = vsyncpa [#allocation3], 0  ;;  %s971_s0 = inlined_call_operand.hbm [shape: f32[2,6,2,128], index: 0, kind: input, shape index: {}]   ;;  %s972_s1 = inlined_call_operand.vmem [shape: s8[2,1,2,128], index: 1, kind: input, shape index: {}]   ;;  %s973_s2 = inlined_call_operand.hbm [shape: f32[2,1,128], index: 2, kind: output, shape index: {0}]   ;;  %s974_s3 = inlined_call_operand.hbm [shape: f32[2,1,128], index: 3, kind: output, shape index: {1}]  }
   0x1   :  { %11 = vsyncpa [#allocation3 + $0x1], 0 }
   0x2   :  { %12 = vsyncpa [#allocation4], 0 }
   0x3   :  { %14 = vsyncpa [#allocation4 + $0x1], 0 }
   0x4   :  { %15 = vsyncpa [#allocation7], 0 }
   0x5   :  { %17 = vsyncpa [#allocation7 + $0x1], 0  ;;  %s754_s12 = smov 0   ;;  %s756_s13 = smov 0  }
   0x6   :  { %s758_s14 = smov 0   ;;  %s760_s15 = smov 0  }
   0x7   :  { %s762_s16 = smov 0   ;;  %s764_s17 = smov 0  }
   0x8 LB: > { %s478_s18 = sadd.s32 4294967295, %s727_s17   ;;  %s479_s19 = sadd.s32 4294967294, %s727_s17   ;;  %s727_s17 = sphi %s764_s17, %s23_s17   ;;  %s723_s16 = sphi %s762_s16, %s989_s16   ;;  %s719_s15 = sphi %s760_s15, %s988_s15   ;;  %s715_s14 = sphi %s758_s14, %s987_s14   ;;  %s711_s13 = sphi %s756_s13, %s986_s13   ;;  %s707_s12 = sphi %s754_s12, %s985_s12  }
   0x9   : > { %s35_s20 = sadd.s32 1, %s723_s16  ;;  %s44_s21 = sadd.s32 1, %s715_s14 }
   0xa   : > { %p37_p0 = scmp.ge.s32.totalorder %s35_s20, 2  ;;  %p51_p1 = scmp.ne.s32.totalorder %s715_s14, %s711_s13 }
   0xb   : > { %p52_p2 = scmp.eq.s32.totalorder %s727_s17, 0  ;;  %p57_p3 = scmp.ne.s32.totalorder %s711_s13, %s707_s12 }
   0xc   : > { %s991_s20 = smov (%p37_p0, %s35_s20), 0  ;;  %p58_p5 = scmp.eq.s32.totalorder %s478_s18, 0 }
   0xd   : > { %p795_p4 = por %p52_p2, %p51_p1  ;;  %s39_s23 = ssub.s32 %s723_s16, %s991_s20 }
   0xe   : > { %p111_p6 = scmp.eq.s32.totalorder %s478_s18, 1  ;;  %p42_p7 = scmp.eq.s32.totalorder %s39_s23, 0 }
   0xf   : > { %p801_p8 = por %p58_p5, %p57_p3  ;;  %p117_p10 = scmp.eq.s32.totalorder %s479_s19, 1 }
  0x10   : > { %p805_p9 = por %p111_p6, %p51_p1  ;;  %p517_p13 = scmp.lt.s32.totalorder %s727_s17, 2 }
  0x11   : > { %s810_s26 = scalar_select %p42_p7, %s715_s14, %s44_s21  }
  0x12   : > { %s978_s25 = scalar_select %p805_p9, 1, 0 }
  0x13   : > { %p812_p11 = por %p117_p10, %p57_p3  ;;  %s165_s28 = sand.u32 1, %s715_s14  }
  0x14   : > { %s493_s29 = smul.u32 12, %s165_s28  ;;  %p822_p0 = pnand %p517_p13, %p795_p4 }
  0x15   : > { %s979_s27 = scalar_select %p812_p11, 1, 0 }
  0x16   : > { %s494_s30 = smul.u32 192, %s723_s16  ;;  %s169_s8 = scalar_lea.vmem [#allocation2], %s493_s29 }
  0x17   : > { %s177_s9 = sshll.u32 %s169_s8, 4  ;;  %s834_s10 = scalar_lea.sflag [#allocation3], %s165_s28  ;;  %s831_s9 = int_to_ptr.vmem [resolvable:$true] %s177_s9 }
  0x18   : > { %s829_s7 = scalar_lea.hbm %s971_s0, %s494_s30  ;;  %p585_p3 = pneg %p822_p0 }
  0x19   : > { %s583_s11 = scalar_lea.hbm %s829_s7, 192  ;;  %s588_s21 = scalar_lea.hbm %s971_s0, 384 }
  0x1a   : > { %p584_p2 = scmp.ne.s32.totalorder %s829_s7, %s583_s11  ;;  %p589_p6 = scmp.lt.u32.totalorder %s829_s7, %s971_s0 }
  0x1b   : > { %p590_p7 = scmp.lt.u32.totalorder %s588_s21, %s583_s11  ;;  %p592_p13 = scmp.lt.u32.totalorder %s583_s11, %s829_s7 }
  0x1c   : > { %p586_p4 = pnand %p585_p3, %p584_p2 }
  0x1d   : > { %p591_p10 = por %p590_p7, %p589_p6 }
  0x1e   : > { %p587_p5 = pneg %p586_p4 }
  0x1f   : > { %p593_p12 = por %p592_p13, %p591_p10 }
  0x21   : > { %p594_p1 = pnand %p593_p12, %p587_p5 }
  0x23   : > { %597 = shalt.err (!%p594_p1)
}
  0x24   : > { %s598_s28 = scalar_lea.vmem %s831_s9, 192  ;;  %s729_s29 = smov [#allocation2]  }
  0x25   : > { %p599_p2 = scmp.ne.s32.totalorder %s831_s9, %s598_s28  ;;  %s603_s30 = sshll.u32 %s729_s29, 4  ;;  %s604_s30 = int_to_ptr.vmem [resolvable:$false] %s603_s30 }
  0x26   : > { %s605_s5 = scalar_lea.vmem %s604_s30, 384  ;;  %p606_p9 = scmp.lt.s32.totalorder %s831_s9, %s604_s30 }
  0x27   : > { %p601_p4 = pnand %p599_p2, %p585_p3  ;;  %p607_p6 = scmp.lt.s32.totalorder %s605_s5, %s598_s28 }
  0x29   : > { %p602_p11 = pneg %p601_p4  ;;  %p608_p7 = por %p607_p6, %p606_p9 }
  0x2b   : > { %p609_p10 = pnand %p608_p7, %p602_p11 }
  0x2d   : > { %612 = shalt.err (!%p609_p10)
}
  0x2e   : > { %s730_s6 = smov 32   ;;  %s731_s8 = smov 2  }
  0x2f   : > { %509 = dma.hbm_to_vmem [thread:$0]  (!%p822_p0), %s829_s7, 192, %s831_s9, %s834_s10, %s730_s6, %s730_s6, %s731_s8  }
  0x30   : > { %p194_p12 = scmp.lt.s32.totalorder %s727_s17, 3  ;;  %p981_p1 = scmp.ge.s32.totalorder %s727_s17, 1 }
  0x32   : > { %p195_p3 = pnand %p981_p1, %p194_p12 }
  0x33   : > { %s866_s11 = sand.u32 (!%p195_p3), 1, %s711_s13  }
  0x34   : > { %198 = sbr.rel (%p195_p3) target bundleno = 360 (0x168), region = 28  ;;  %s201_s19 = scalar_lea.sflag (!%p195_p3), [#allocation3], %s866_s11 }
  0x35   : > { %s495_s18 = smul.u32 (!%p195_p3), 12, %s866_s11 }
  0x37   : > { %s204_s21 = scalar_lea.vmem (!%p195_p3), [#allocation2], %s495_s18 }
  0x3b   : > { %694 = dma.done.wait (%p801_p8), %s201_s19, 192  }
  0x3c   : > { %696 = vsyncadd (%p801_p8), %s201_s19, 4294967104  ;;  %v244_v0 = vld [vmem:[%s204_s21] sm:$0x3]  ;;  %v484_v1 = vld [vmem:[%s204_s21 + $0x2] sm:$0x3]  ;;  %p236_p8 = scmp.lt.s32.totalorder %s719_s15, 1 }
  0x3d   : > { %v247_v2 = vmax.f32 %v244_v0, %v484_v1  ;;  %v485_v3 = vld [vmem:[%s204_s21 + $0x4] sm:$0x3]  ;;  %v486_v4 = vld [vmem:[%s204_s21 + $0x6] sm:$0x3]  ;;  %v487_v6 = vld [vmem:[%s204_s21 + $0x8] sm:$0x3] }
  0x3e   : > { %v488_v8 = vld [vmem:[%s204_s21 + $0xa] sm:$0x3]  ;;  %s237_s24 = scalar_select %p236_p8, %s719_s15, 1  ;;  %vm303_vm6 = vcmask 1041408  }
  0x3f   : > { %v250_v5 = vmax.f32 %v247_v2, %v485_v3  ;;  %s489_s10 = sshll.u32 %s719_s15, 4  ;;  %s229_s22 = scalar_lea.vmem [#allocation5], %s866_s11 }
  0x40   : > { %s241_s9 = scalar_lea.vmem %s972_s1, %s237_s24  ;;  %s346_s23 = sshll.u32 %s229_s22, 4  ;;  %s891_s23 = int_to_ptr.vmem [resolvable:$true] %s346_s23 }
  0x41   : > { %v253_v7 = vmax.f32 %v250_v5, %v486_v4  ;;  %v242_v25 = vld [vmem:[%s241_s9] sm:$0x1]  ;;  %s235_s28 = scalar_lea.vmem [#allocation6], %s866_s11  ;;  %s889_s6 = scalar_lea.hbm %s973_s2, %s489_s10 }
  0x42   : > { %v243_v29 = vunpack.c.0.s8 %v242_v25  ;;  %s360_s29 = sshll.u32 %s235_s28, 4  ;;  %s329_s18 = scalar_lea.sflag [#allocation4], %s866_s11  ;;  %s893_s29 = int_to_ptr.vmem [resolvable:$true] %s360_s29 }
  0x43   : > { %v256_v9 = vmax.f32 %v253_v7, %v487_v6  ;;  %s613_s19 = scalar_lea.vmem %s891_s23, 16  ;;  %p982_p11 = scmp.ne.s32.totalorder %s978_s25, 0 }
  0x44   : > { %vm264_vm0 = vcmp.eq.s32.totalorder %v243_v29, 0  ;;  %vm270_vm1 = vcmp.eq.s32.totalorder %v243_v29, 1  ;;  %vm276_vm2 = vcmp.eq.s32.totalorder %v243_v29, 2  ;;  %vm282_vm3 = vcmp.eq.s32.totalorder %v243_v29, 3  ;;  %p614_p9 = scmp.ne.s32.totalorder %s891_s23, %s613_s19  ;;  %s732_s21 = smov [#allocation5]  }
  0x45   : > { %v259_v10 = vmax.f32 %v256_v9, %v488_v8  ;;  %vm288_vm4 = vcmp.eq.s32.totalorder %v243_v29, 4  ;;  %vm294_vm5 = vcmp.eq.s32.totalorder %v243_v29, 5  ;;  %s617_s24 = sshll.u32 %s732_s21, 4  ;;  %s618_s24 = int_to_ptr.vmem [resolvable:$false] %s617_s24 }
  0x46   : > { %p615_p0 = pnand %p614_p9, %p982_p11  ;;  %s619_s4 = scalar_lea.vmem %s618_s24, 32 }
  0x47   : > { %v260_v11 = vsub.f32 %v244_v0, %v259_v10  ;;  %v266_v12 = vsub.f32 %v484_v1, %v259_v10  ;;  %v272_v13 = vsub.f32 %v485_v3, %v259_v10  ;;  %v278_v14 = vsub.f32 %v486_v4, %v259_v10  ;;  %p620_p13 = scmp.lt.s32.totalorder %s891_s23, %s618_s24  ;;  %p621_p2 = scmp.lt.s32.totalorder %s619_s4, %s613_s19 }
  0x48   : > { %v284_v15 = vsub.f32 %v487_v6, %v259_v10  ;;  %v290_v20 = vsub.f32 %v488_v8, %v259_v10  ;;  %p616_p5 = pneg %p615_p0 }
  0x49   : > { %v261_v16 = vmul.f32 1.442695, %v260_v11  ;;  %v267_v17 = vmul.f32 1.442695, %v266_v12  ;;  %v273_v18 = vmul.f32 1.442695, %v272_v13  ;;  %p622_p4 = por %p621_p2, %p620_p13 }
  0x4a   : > { %v279_v19 = vmul.f32 1.442695, %v278_v14  ;;  %v285_v21 = vmul.f32 1.442695, %v284_v15  ;;  %v291_v22 = vmul.f32 1.442695, %v290_v20 }
  0x4b   : > { %569 = vpow2.f32 %v261_v16  ;;  %p623_p6 = pnand %p622_p4, %p616_p5 }
  0x4c   : > { %571 = vpow2.f32 %v267_v17 }
  0x4d   : > { %573 = vpow2.f32 %v273_v18 }
  0x4e   : > { %575 = vpow2.f32 %v279_v19 }
  0x4f   : > { %577 = vpow2.f32 %v285_v21 }
  0x50   : > { %579 = vpow2.f32 %v291_v22 }
  0x55   : > { %v570_v23 = vpop.eup %569 }
  0x56   : > { %v572_v24 = vpop.eup %571  ;;  %v265_v36 = vsel %vm264_vm0, %v570_v23, 0.0 }
  0x57   : > { %v574_v26 = vpop.eup %573  ;;  %v269_v27 = vadd.f32 %v572_v24, %v570_v23  ;;  %v271_v37 = vsel %vm270_vm1, %v572_v24, %v265_v36 }
  0x58   : > { %v576_v28 = vpop.eup %575  ;;  %v277_v38 = vsel %vm276_vm2, %v574_v26, %v271_v37 }
  0x59   : > { %v275_v30 = vadd.f32 %v574_v26, %v269_v27  ;;  %v578_v31 = vpop.eup %577  ;;  %v283_v39 = vsel %vm282_vm3, %v576_v28, %v277_v38 }
  0x5a   : > { %v580_v33 = vpop.eup %579  ;;  %v289_v41 = vsel %vm288_vm4, %v578_v31, %v283_v39 }
  0x5b   : > { %v281_v32 = vadd.f32 %v576_v28, %v275_v30  ;;  %v295_v44 = vsel %vm294_vm5, %v580_v33, %v289_v41 }
  0x5d   : > { %v287_v34 = vadd.f32 %v578_v31, %v281_v32 }
  0x5f   : > { %v293_v35 = vadd.f32 %v580_v33, %v287_v34 }
  0x61   : > { %581 = vrcp.f32 %v293_v35 }
  0x6b   : > { %v582_v40 = vpop.eup %581 }
  0x6c   : > { %v297_v42 = vmul.f32 %v582_v40, %v293_v35 }
  0x6e   : > { %v298_v43 = vsub.f32 2.0, %v297_v42 }
  0x70   : > { %v299_v45 = vmul.f32 %v582_v40, %v298_v43 }
  0x72   : > { %v300_v46 = vmul.f32 %v299_v45, %v295_v44  ;;  %v301_v47 = vmul.f32 %v299_v45, %v293_v35 }
  0x74   : > { %v304_v48 = vsel %vm303_vm6, %v300_v46, 0.0  ;;  %v302_v49 = vadd.f32 1.0, %v301_v47 }
  0x75   : > { %305 = vadd.xlane.f32.xlu0 %v304_v48 }
  0x76   : > { %v314_v50 = vsel %vm303_vm6, %v302_v49, 0.0 }
  0x79   : > { %315 = vadd.xlane.f32.xlu0 %v314_v50 }
 0x102   : > { %v306_v51 = vpop.xlane.xlu0 %305 }
 0x103   : > { %v307_v52 = vrot.slane %v306_v51, 4 }
 0x105   : > { %v308_v53 = vadd.f32 %v307_v52, %v306_v51 }
 0x106   : > { %v316_v54 = vpop.xlane.xlu0 %315 }
 0x107   : > { %v309_v55 = vrot.slane %v308_v53, 2  ;;  %v317_v56 = vrot.slane %v316_v54, 4 }
 0x109   : > { %v318_v57 = vadd.f32 %v317_v56, %v316_v54  ;;  %v310_v58 = vadd.f32 %v309_v55, %v308_v53 }
 0x10b   : > { %v319_v59 = vrot.slane %v318_v57, 2  ;;  %v311_v60 = vrot.slane %v310_v58, 1 }
 0x10d   : > { %v320_v61 = vadd.f32 %v319_v59, %v318_v57  ;;  %v312_v62 = vadd.f32 %v311_v60, %v310_v58 }
 0x10f   : > { %496 = vpush %v312_v62  ;;  %v321_v63 = vrot.slane %v320_v61, 1 }
 0x111   : > { %v322_v0 = vadd.f32 %v321_v63, %v320_v61 }
 0x113   : > { %498 = vpush %v322_v0 }
 0x140   : > { %s497_s8 = spop %496 }
 0x141   : > { %v324_v1 = vstv %s497_s8 }
 0x142   : > { %325 = vst [vmem:[%s229_s22] sm:$0x1] %v324_v1 }
 0x143   : > { %626 = shalt.err (!%p623_p6)
}
 0x144   : > { %s627_s7 = scalar_lea.hbm %s889_s6, 16  ;;  %s631_s30 = scalar_lea.hbm %s973_s2, 32 }
 0x145   : > { %p628_p7 = scmp.ne.s32.totalorder %s889_s6, %s627_s7  ;;  %p632_p1 = scmp.lt.u32.totalorder %s889_s6, %s973_s2 }
 0x146   : > { %p633_p3 = scmp.lt.u32.totalorder %s631_s30, %s627_s7  ;;  %p635_p9 = scmp.lt.u32.totalorder %s627_s7, %s889_s6 }
 0x147   : > { %p629_p10 = pnand %p628_p7, %p982_p11 }
 0x148   : > { %p634_p8 = por %p633_p3, %p632_p1 }
 0x149   : > { %p630_p12 = pneg %p629_p10 }
 0x14a   : > { %p636_p0 = por %p635_p9, %p634_p8 }
 0x14c   : > { %p637_p5 = pnand %p636_p0, %p630_p12 }
 0x14e   : > { %640 = shalt.err (!%p637_p5)
}
 0x14f   : > { %502 = dma.vmem_to_hbm [thread:$0]  (%p982_p11), %s891_s23, 16, %s889_s6, %s329_s18  }
 0x150   : > { %s499_s19 = spop %498  ;;  %s922_s4 = scalar_lea.hbm %s974_s3, %s489_s10 }
 0x151   : > { %v326_v2 = vstv %s499_s19  ;;  %s333_s7 = scalar_lea.sflag [#allocation7], %s866_s11  ;;  %s641_s9 = scalar_lea.vmem %s893_s29, 16 }
 0x152   : > { %327 = vst [vmem:[%s235_s28] sm:$0x1] %v326_v2  ;;  %p642_p13 = scmp.ne.s32.totalorder %s893_s29, %s641_s9  ;;  %s733_s22 = smov [#allocation6]  }
 0x153   : > { %s645_s30 = sshll.u32 %s733_s22, 4  ;;  %s646_s30 = int_to_ptr.vmem [resolvable:$false] %s645_s30 }
 0x154   : > { %p643_p2 = pnand %p642_p13, %p982_p11  ;;  %s647_s23 = scalar_lea.vmem %s646_s30, 32 }
 0x155   : > { %p648_p6 = scmp.lt.s32.totalorder %s893_s29, %s646_s30  ;;  %p649_p7 = scmp.lt.s32.totalorder %s647_s23, %s641_s9 }
 0x156   : > { %p644_p4 = pneg %p643_p2 }
 0x157   : > { %p650_p10 = por %p649_p7, %p648_p6 }
 0x159   : > { %p651_p12 = pnand %p650_p10, %p644_p4 }
 0x15b   : > { %654 = shalt.err (!%p651_p12)
}
 0x15c   : > { %s655_s15 = scalar_lea.hbm %s922_s4, 16  ;;  %s659_s28 = scalar_lea.hbm %s974_s3, 32 }
 0x15d   : > { %p656_p1 = scmp.ne.s32.totalorder %s922_s4, %s655_s15  ;;  %p660_p9 = scmp.lt.u32.totalorder %s922_s4, %s974_s3 }
 0x15e   : > { %p661_p0 = scmp.lt.u32.totalorder %s659_s28, %s655_s15  ;;  %p663_p13 = scmp.lt.u32.totalorder %s655_s15, %s922_s4 }
 0x15f   : > { %p657_p3 = pnand %p656_p1, %p982_p11 }
 0x160   : > { %p662_p5 = por %p661_p0, %p660_p9 }
 0x161   : > { %p658_p8 = pneg %p657_p3 }
 0x162   : > { %p664_p2 = por %p663_p13, %p662_p5 }
 0x164   : > { %p665_p4 = pnand %p664_p2, %p658_p8 }
 0x166   : > { %668 = shalt.err (!%p665_p4)
}
 0x167   : > { %503 = dma.vmem_to_hbm [thread:$0]  (%p982_p11), %s893_s29, 16, %s922_s4, %s333_s7  }
 0x168 PF: > { %s372_s5 = sand.u32 1, %s707_s12   ;;  %p983_p6 = scmp.ne.s32.totalorder %s979_s27, 0 }
 0x169   : > { %p984_p7 = scmp.ge.s32.totalorder %s727_s17, 2  ;;  %s373_s8 = scalar_lea.sflag [#allocation4], %s372_s5 }
 0x16b   : > { %p511_p10 = pnand %p984_p7, %p983_p6 }
 0x16d   : > { %698 = dma.done.wait (!%p511_p10), %s373_s8, 16  }
 0x16e   : > { %700 = vsyncadd (!%p511_p10), %s373_s8, 4294967280  ;;  %s381_s19 = scalar_lea.sflag [#allocation7], %s372_s5 }
 0x16f   : > { %702 = dma.done.wait (!%p511_p10), %s381_s19, 16  }
 0x170   : > { %704 = vsyncadd (!%p511_p10), %s381_s19, 4294967280  ;;  %s23_s17 = sadd.s32 1, %s727_s17   ;;  %s985_s12 = smov %s711_s13 }
 0x171   : > { %p20_p12 = scmp.ge.s32.totalorder %s23_s17, 4   ;;  %s986_s13 = smov %s715_s14 }
 0x172   : > { %s987_s14 = smov %s810_s26  ;;  %s988_s15 = smov %s723_s16 }
 0x173   : > { %s989_s16 = smov %s991_s20  ;;  %22 = sbr.rel (!%p20_p12) target bundleno = 8 (0x8), region = 98 }
 0x17a   :  { %385 = vsyncpa [#allocation3], 1 }
 0x17b   :  { %387 = vsyncpa [#allocation3 + $0x1], 1 }
 0x17c   :  { %388 = vsyncpa [#allocation4], 1 }
 0x17d   :  { %390 = vsyncpa [#allocation4 + $0x1], 1 }
 0x17e   :  { %391 = vsyncpa [#allocation7], 1 }
 0x17f   :  { %393 = vsyncpa [#allocation7 + $0x1], 1 }

</bundles_post_ra>
